<compile_context>
chip_gen: v7x
topology: tpu7x:2x2x1
jax: 0.10.0
libtpu: 0.0.40
codegen_flags: <defaults>
</compile_context>

<pallas_src>
import jax
import jax.numpy as jnp
from jax import lax
from jax.experimental import pallas as pl
from jax.experimental.pallas import tpu as pltpu


def ecp_endpoint_kernel(cand_ref, feat_ref, wemb_ref, out_ref):
    """One grid step = one block of Bb batch elements.

    cand_ref : VMEM int32 (Bb, N, 2)        -- (start, end) span indices
    feat_ref : VMEM      (Bb, S, H)         -- sequence features (native dtype)
    wemb_ref : VMEM      (NW, Wd)           -- span-width embedding table
    out_ref  : VMEM      (Bb, N, 2H + Wd)   -- endpoint span embeddings
    """
    Bb, N, _ = cand_ref.shape
    _, S, H = feat_ref.shape
    NW, Wd = wemb_ref.shape

    cand = cand_ref[...].astype(jnp.int32)             # (Bb, N, 2)
    # keepdims slices: N stays on the sublane axis, lane-broadcast later.
    starts = cand[:, :, 0:1]                            # (Bb, N, 1)
    ends = cand[:, :, 1:2]                               # (Bb, N, 1)
    valid = ends > 0                                     # (Bb, N, 1) bool
    m_i = valid.astype(jnp.int32)

    # Masked + clamped indices (clamp = OOB safety net; exact for valid input).
    s_idx = jnp.clip(starts * m_i, 0, S - 1)             # (Bb, N, 1)
    e_idx = jnp.clip(ends * m_i, 0, S - 1)                # (Bb, N, 1)
    w_idx = jnp.clip(e_idx - s_idx, 0, NW - 1)             # (Bb, N, 1)

    feat = feat_ref[...]                                  # (Bb, S, H) native dtype
    wemb = wemb_ref[...]                                   # (NW, Wd)

    # Fused start/end one-hot gather: one (Bb, 2N, S) x (Bb, S, H) matmul.
    # Invalid spans get all-zero rows, so the final `* mask` of the reference
    # falls out of the matmul for free.
    se_idx = jnp.concatenate([s_idx, e_idx], axis=1)        # (Bb, 2N, 1)
    valid_se = jnp.concatenate([valid, valid], axis=1)        # (Bb, 2N, 1)
    seq_iota = lax.broadcasted_iota(jnp.int32, (Bb, 2 * N, S), 2)
    oh_se = ((seq_iota == se_idx) & valid_se).astype(feat.dtype)      # (Bb, 2N, S)
    se_emb = jnp.einsum('bns,bsh->bnh', oh_se, feat,
                        preferred_element_type=jnp.float32)            # (Bb, 2N, H)

    # Width-embedding one-hot gather.
    w_iota = lax.broadcasted_iota(jnp.int32, (Bb, N, NW), 2)
    oh_w = ((w_iota == w_idx) & valid).astype(wemb.dtype)               # (Bb, N, NW)
    width_emb = jnp.einsum('bnw,wd->bnd', oh_w, wemb,
                           preferred_element_type=jnp.float32)          # (Bb, N, Wd)

    # Three 128-lane-aligned sub-stores (no full-tile concat copy).
    out_dtype = out_ref.dtype
    out_ref[:, :, :H] = se_emb[:, :N, :].astype(out_dtype)
    out_ref[:, :, H:2 * H] = se_emb[:, N:, :].astype(out_dtype)
    out_ref[:, :, 2 * H:] = width_emb.astype(out_dtype)


def _choose_block_b(B, S, H, N, NW, Wd, feat_itemsize, out_itemsize,
                    vmem_budget_bytes):
    """Pick a batch block: fit a conservative cross-generation VMEM budget and
    keep the grid at >= 2 steps (pipelining + v7x 2-TC sharding) when B >= 2."""
    D = 2 * H + Wd
    per_b = (2 * S * H * feat_itemsize              # double-buffered features
             + 2 * N * 2 * 4                        # double-buffered candidates
             + 2 * N * D * out_itemsize             # double-buffered output
             + N * (2 * S + NW) * feat_itemsize     # one-hots (transient)
             + 2 * N * D * 4)                       # f32 matmul results
    blk = max(1, vmem_budget_bytes // max(per_b, 1))
    blk = min(int(blk), B)
    if B >= 2:
        blk = min(blk, -(-B // 2))                   # at least 2 grid steps
    return max(1, blk)


def ecp_endpoint_span_extractor(features, clause_candidates, width_embedding,
                                *, block_b=None):
    """features: (B, S, H), clause_candidates: (B, N, 2) int,
    width_embedding: (num_width_embeddings, span_width_embedding_dim).
    Returns endpoint span embeddings (B, N, 2H + span_width_embedding_dim)."""
    B, S, H = features.shape
    _, N, _ = clause_candidates.shape
    NW, Wd = width_embedding.shape
    D = 2 * H + Wd

    feat_itemsize = jnp.dtype(features.dtype).itemsize
    out_itemsize = feat_itemsize

    # ~10 MiB per-step budget: safe under v5e's 16 MiB scoped default and far
    # below v7x's 64 MiB physical VMEM / 32 MiB scoped default.
    if block_b is None:
        block_b = _choose_block_b(B, S, H, N, NW, Wd, feat_itemsize,
                                  out_itemsize, vmem_budget_bytes=10 << 20)
    block_b = max(1, min(block_b, B))
    grid = (pl.cdiv(B, block_b),)

    # Explicit VMEM limit from the actual per-step footprint (+ headroom),
    # capped at 32 MiB so it is valid on every generation.
    per_step = (2 * block_b * S * H * feat_itemsize
                + 2 * block_b * N * 2 * 4
                + 2 * block_b * N * D * out_itemsize
                + 2 * NW * Wd * jnp.dtype(width_embedding.dtype).itemsize
                + block_b * N * (2 * S + NW) * feat_itemsize
                + 2 * block_b * N * D * 4)
    vmem_limit = int(min(32 << 20, max(2 * per_step, 4 << 20)))

    cost = pl.CostEstimate(
        flops=2 * B * N * (2 * S * H + NW * Wd),
        transcendentals=0,
        bytes_accessed=(B * S * H * feat_itemsize
                        + B * N * 2 * 4
                        + NW * Wd * jnp.dtype(width_embedding.dtype).itemsize
                        + B * N * D * out_itemsize),
    )

    return pl.pallas_call(
        ecp_endpoint_kernel,
        out_shape=jax.ShapeDtypeStruct((B, N, D), features.dtype),
        grid=grid,
        in_specs=[
            pl.BlockSpec((block_b, N, 2), lambda b: (b, 0, 0)),
            pl.BlockSpec((block_b, S, H), lambda b: (b, 0, 0)),
            pl.BlockSpec((NW, Wd), lambda b: (0, 0)),   # resident width table
        ],
        out_specs=pl.BlockSpec((block_b, N, D), lambda b: (b, 0, 0)),
        compiler_params=pltpu.CompilerParams(
            dimension_semantics=("parallel",),
            vmem_limit_bytes=vmem_limit),
        cost_estimate=cost,
    )(clause_candidates.astype(jnp.int32), features, width_embedding)


def ecp_endpoint_span_extractor_ref(features, cand, wemb):
    """Pure-JAX reference (mirrors AllenNLP EndpointSpanExtractor)."""
    mask = (cand[:, :, 1] > 0)
    m_i = mask.astype(cand.dtype)
    s = cand[:, :, 0] * m_i
    e = cand[:, :, 1] * m_i
    start_emb = jnp.take_along_axis(features, s[:, :, None], axis=1)
    end_emb = jnp.take_along_axis(features, e[:, :, None], axis=1)
    w_emb = wemb[e - s]
    out = jnp.concatenate([start_emb, end_emb, w_emb], axis=-1)
    return out * mask[:, :, None].astype(features.dtype)


if __name__ == "__main__":
    # Small shapes consistent with the module's forward.
    B, S, H = 2, 16, 128                 # batch, seq_len, config.hidden_size
    N = 8                                # number of clause candidates
    NW, Wd = 16, 128                     # num_width_embeddings, span_width_embedding_dim

    key = jax.random.PRNGKey(0)
    k_feat, k_wemb = jax.random.split(key)
    features = jax.random.normal(k_feat, (B, S, H), dtype=jnp.float32)
    # Deterministic "parameter" init for the span-width embedding table.
    width_embedding = jax.random.normal(k_wemb, (NW, Wd), dtype=jnp.float32) * 0.02

    # Clause candidates: (start, end) with end >= start, widths < NW.
    # end == 0 marks padded / invalid spans (masked out).
    clause_candidates = jnp.array(
        [
            [[0, 3], [2, 5], [4, 9], [7, 12], [10, 15], [1, 1], [0, 0], [0, 0]],
            [[1, 4], [3, 3], [5, 11], [8, 14], [12, 15], [0, 0], [0, 0], [0, 0]],
        ],
        dtype=jnp.int32,
    )

    out = ecp_endpoint_span_extractor(features, clause_candidates, width_embedding)
    out = jax.block_until_ready(out)

    ref = ecp_endpoint_span_extractor_ref(features, clause_candidates, width_embedding)
    assert out.shape == (B, N, 2 * H + Wd), out.shape
    assert jnp.allclose(out, ref, atol=1e-6, rtol=1e-6), "mismatch vs reference"

    print("KERNEL_OK")
</pallas_src>

<mosaic_0001>
module attributes {stable_mosaic.version = 11 : i64} {
  func.func @ecp_endpoint_kernel(%arg0: i32, %arg1: memref<1x8x2xi32, #tpu.memory_space<vmem>>, %arg2: memref<1x16x128xf32, #tpu.memory_space<vmem>>, %arg3: memref<16x128xf32, #tpu.memory_space<vmem>>, %arg4: memref<1x8x384xf32, #tpu.memory_space<vmem>>) attributes {dimension_semantics = [#tpu.dimension_semantics<parallel>], iteration_bounds = array<i64: 2>, scalar_prefetch = 0 : i64, scratch_operands = 0 : i64, tpu.core_type = #tpu.core_type<tc>, window_params = [{transform_indices = @transform_0, window_bounds = array<i64: 1, 8, 2>}, {transform_indices = @transform_1, window_bounds = array<i64: 1, 16, 128>}, {pipeline_mode = #tpu.pipeline_mode<synchronous>, transform_indices = @transform_2, window_bounds = array<i64: 16, 128>}, {transform_indices = @transform_3, window_bounds = array<i64: 1, 8, 384>}]} {
    %c0 = arith.constant 0 : index
    %c0_0 = arith.constant 0 : index
    %c0_1 = arith.constant 0 : index
    %0 = vector.load %arg1[%c0, %c0_0, %c0_1] : memref<1x8x2xi32, #tpu.memory_space<vmem>>, vector<1x8x2xi32>
    %1 = vector.extract_strided_slice %0 {offsets = [0, 0, 0], sizes = [1, 8, 1], strides = [1, 1, 1]} : vector<1x8x2xi32> to vector<1x8x1xi32>
    %2 = vector.extract_strided_slice %0 {offsets = [0, 0, 1], sizes = [1, 8, 1], strides = [1, 1, 1]} : vector<1x8x2xi32> to vector<1x8x1xi32>
    %c0_i32 = arith.constant 0 : i32
    %3 = vector.broadcast %c0_i32 : i32 to vector<1x8x1xi32>
    %4 = arith.cmpi sgt, %2, %3 : vector<1x8x1xi32>
    %5 = arith.extui %4 : vector<1x8x1xi1> to vector<1x8x1xi32>
    %6 = arith.muli %1, %5 : vector<1x8x1xi32>
    %c0_i32_2 = arith.constant 0 : i32
    %c15_i32 = arith.constant 15 : i32
    %7 = vector.broadcast %c0_i32_2 : i32 to vector<1x8x1xi32>
    %8 = arith.maxsi %7, %6 : vector<1x8x1xi32>
    %9 = vector.broadcast %c15_i32 : i32 to vector<1x8x1xi32>
    %10 = arith.minsi %9, %8 : vector<1x8x1xi32>
    %11 = arith.muli %2, %5 : vector<1x8x1xi32>
    %c0_i32_3 = arith.constant 0 : i32
    %c15_i32_4 = arith.constant 15 : i32
    %12 = vector.broadcast %c0_i32_3 : i32 to vector<1x8x1xi32>
    %13 = arith.maxsi %12, %11 : vector<1x8x1xi32>
    %14 = vector.broadcast %c15_i32_4 : i32 to vector<1x8x1xi32>
    %15 = arith.minsi %14, %13 : vector<1x8x1xi32>
    %16 = arith.subi %15, %10 : vector<1x8x1xi32>
    %c0_i32_5 = arith.constant 0 : i32
    %c15_i32_6 = arith.constant 15 : i32
    %17 = vector.broadcast %c0_i32_5 : i32 to vector<1x8x1xi32>
    %18 = arith.maxsi %17, %16 : vector<1x8x1xi32>
    %19 = vector.broadcast %c15_i32_6 : i32 to vector<1x8x1xi32>
    %20 = arith.minsi %19, %18 : vector<1x8x1xi32>
    %c0_7 = arith.constant 0 : index
    %c0_8 = arith.constant 0 : index
    %c0_9 = arith.constant 0 : index
    %21 = vector.load %arg2[%c0_7, %c0_8, %c0_9] : memref<1x16x128xf32, #tpu.memory_space<vmem>>, vector<1x16x128xf32>
    %c0_10 = arith.constant 0 : index
    %c0_11 = arith.constant 0 : index
    %22 = vector.load %arg3[%c0_10, %c0_11] : memref<16x128xf32, #tpu.memory_space<vmem>>, vector<16x128xf32>
    %23 = tpu.concatenate %10, %15 in 1 : vector<1x8x1xi32>, vector<1x8x1xi32> -> vector<1x16x1xi32>
    %24 = tpu.concatenate %4, %4 in 1 : vector<1x8x1xi1>, vector<1x8x1xi1> -> vector<1x16x1xi1>
    %25 = tpu.iota {dimensions = array<i32: 2>} : vector<1x16x16xi32>
    %26 = vector.broadcast %23 : vector<1x16x1xi32> to vector<1x16x16xi32>
    %27 = arith.cmpi eq, %25, %26 : vector<1x16x16xi32>
    %28 = vector.broadcast %24 : vector<1x16x1xi1> to vector<1x16x16xi1>
    %29 = arith.andi %27, %28 : vector<1x16x16xi1>
    %30 = arith.extui %29 : vector<1x16x16xi1> to vector<1x16x16xi32>
    %31 = arith.sitofp %30 : vector<1x16x16xi32> to vector<1x16x16xf32>
    "tpu.trace_start"() <{level = 10 : i32, message = "bns,bsh->bnh"}> : () -> ()
    %cst = arith.constant dense<0.000000e+00> : vector<1x16x128xf32>
    %32 = tpu.matmul %31, %21, %cst {dimension_numbers = #tpu.dot_dimension_numbers<[2], [1], [1], [2], [0, 0, 0, 1, 1, 2], [0], [0]>} : vector<1x16x16xf32>, vector<1x16x128xf32>, vector<1x16x128xf32> -> vector<1x16x128xf32>
    "tpu.trace_stop"() : () -> ()
    %33 = tpu.iota {dimensions = array<i32: 2>} : vector<1x8x16xi32>
    %34 = vector.broadcast %20 : vector<1x8x1xi32> to vector<1x8x16xi32>
    %35 = arith.cmpi eq, %33, %34 : vector<1x8x16xi32>
    %36 = vector.broadcast %4 : vector<1x8x1xi1> to vector<1x8x16xi1>
    %37 = arith.andi %35, %36 : vector<1x8x16xi1>
    %38 = arith.extui %37 : vector<1x8x16xi1> to vector<1x8x16xi32>
    %39 = arith.sitofp %38 : vector<1x8x16xi32> to vector<1x8x16xf32>
    "tpu.trace_start"() <{level = 10 : i32, message = "bnw,wd->bnd"}> : () -> ()
    %cst_12 = arith.constant dense<0.000000e+00> : vector<1x8x128xf32>
    %40 = tpu.matmul %39, %22, %cst_12 {dimension_numbers = #tpu.dot_dimension_numbers<[2], [0], [0, 1], [1], [0, 0, 0, 1, 1, 1], [], []>} : vector<1x8x16xf32>, vector<16x128xf32>, vector<1x8x128xf32> -> vector<1x8x128xf32>
    "tpu.trace_stop"() : () -> ()
    %41 = vector.extract_strided_slice %32 {offsets = [0, 0, 0], sizes = [1, 8, 128], strides = [1, 1, 1]} : vector<1x16x128xf32> to vector<1x8x128xf32>
    %c0_13 = arith.constant 0 : index
    %c0_14 = arith.constant 0 : index
    %c0_15 = arith.constant 0 : index
    %42 = vector.load %arg4[%c0_13, %c0_14, %c0_15] : memref<1x8x384xf32, #tpu.memory_space<vmem>>, vector<1x8x128xf32>
    tpu.vector_store %arg4[%c0_13, %c0_14, %c0_15], %41 {strides = array<i32>} : memref<1x8x384xf32, #tpu.memory_space<vmem>>, vector<1x8x128xf32>,
    %43 = vector.extract_strided_slice %32 {offsets = [0, 8, 0], sizes = [1, 8, 128], strides = [1, 1, 1]} : vector<1x16x128xf32> to vector<1x8x128xf32>
    %c0_16 = arith.constant 0 : index
    %c0_17 = arith.constant 0 : index
    %c128 = arith.constant 128 : index
    %44 = vector.load %arg4[%c0_16, %c0_17, %c128] : memref<1x8x384xf32, #tpu.memory_space<vmem>>, vector<1x8x128xf32>
    tpu.vector_store %arg4[%c0_16, %c0_17, %c128], %43 {strides = array<i32>} : memref<1x8x384xf32, #tpu.memory_space<vmem>>, vector<1x8x128xf32>,
    %c0_18 = arith.constant 0 : index
    %c0_19 = arith.constant 0 : index
    %c256 = arith.constant 256 : index
    %45 = vector.load %arg4[%c0_18, %c0_19, %c256] : memref<1x8x384xf32, #tpu.memory_space<vmem>>, vector<1x8x128xf32>
    tpu.vector_store %arg4[%c0_18, %c0_19, %c256], %40 {strides = array<i32>} : memref<1x8x384xf32, #tpu.memory_space<vmem>>, vector<1x8x128xf32>,
    return
  }
  func.func @transform_0(%arg0: i32) -> (i32, i32, i32) {
    %c0_i32 = arith.constant 0 : i32
    %c0_i32_0 = arith.constant 0 : i32
    %c0_i32_1 = arith.constant 0 : i32
    return %arg0, %c0_i32, %c0_i32_0 : i32, i32, i32
  }
  func.func @transform_1(%arg0: i32) -> (i32, i32, i32) {
    %c0_i32 = arith.constant 0 : i32
    %c0_i32_0 = arith.constant 0 : i32
    %c0_i32_1 = arith.constant 0 : i32
    return %arg0, %c0_i32, %c0_i32_0 : i32, i32, i32
  }
  func.func @transform_2(%arg0: i32) -> (i32, i32) {
    %c0_i32 = arith.constant 0 : i32
    %c0_i32_0 = arith.constant 0 : i32
    %c0_i32_1 = arith.constant 0 : i32
    return %c0_i32, %c0_i32_0 : i32, i32
  }
  func.func @transform_3(%arg0: i32) -> (i32, i32, i32) {
    %c0_i32 = arith.constant 0 : i32
    %c0_i32_0 = arith.constant 0 : i32
    %c0_i32_1 = arith.constant 0 : i32
    return %arg0, %c0_i32, %c0_i32_0 : i32, i32, i32
  }
}

</mosaic_0001>

<bundles_post_ra>
// kernel: tpu_custom_call.1
= control target key start
LH: loop header
LB: loop body
LE: loop exit
PB: predicated region body
PF: predicated region fallthrough
CT: control target
= control target key end

     0   :  { %8 = vsyncpa [#allocation3], 0  ;;  %s928_s0 = inlined_call_operand.vmem [shape: s32[2,8,2], index: 0, kind: input, shape index: {}]   ;;  %s929_s1 = inlined_call_operand.hbm [shape: f32[2,16,128], index: 1, kind: input, shape index: {}]   ;;  %s930_s2 = inlined_call_operand.vmem [shape: f32[16,128], index: 2, kind: input, shape index: {}]   ;;  %s931_s3 = inlined_call_operand.hbm [shape: f32[2,8,384], index: 3, kind: output, shape index: {}]  }
   0x1   :  { %10 = vsyncpa [#allocation3 + $0x1], 0 }
   0x2   :  { %11 = vsyncpa [#allocation4], 0 }
   0x3   :  { %13 = vsyncpa [#allocation4 + $0x1], 0  ;;  %s752_s12 = smov 0   ;;  %s754_s13 = smov 0  }
   0x4   :  { %s756_s14 = smov 0   ;;  %s758_s15 = smov 0  }
   0x5 LB: > { %s773_s16 = sadd.s32 4294967295, %s719_s15   ;;  %s516_s17 = sadd.s32 4294967294, %s719_s15   ;;  %s719_s15 = sphi %s758_s15, %s944_s15   ;;  %s715_s14 = sphi %s756_s14, %s943_s14   ;;  %s711_s13 = sphi %s754_s13, %s942_s13   ;;  %s707_s12 = sphi %s752_s12, %s941_s12  }
   0x6   : > { %s777_s18 = sadd.s32 1, %s719_s15   ;;  %s52_s19 = sadd.s32 1, %s715_s14 }
   0x7   : > { %s49_s20 = ssub.s32 %s719_s15, %s777_s18  ;;  %p59_p0 = scmp.ne.s32.totalorder %s715_s14, %s711_s13 }
   0x8   : > { %p50_p1 = scmp.eq.s32.totalorder %s49_s20, 0  ;;  %p60_p2 = scmp.eq.s32.totalorder %s719_s15, 0 }
   0x9   : > { %p65_p3 = scmp.ne.s32.totalorder %s711_s13, %s707_s12  ;;  %p66_p4 = scmp.eq.s32.totalorder %s773_s16, 0 }
   0xa   : > { %s789_s21 = scalar_select %p50_p1, %s715_s14, %s52_s19  }
   0xb   : > { %p791_p5 = por %p60_p2, %p59_p0  ;;  %p795_p6 = por %p66_p4, %p65_p3 }
   0xc   : > { %p110_p7 = scmp.eq.s32.totalorder %s773_s16, 1  ;;  %p116_p8 = scmp.eq.s32.totalorder %s516_s17, 1 }
   0xd   : > { %p577_p10 = scmp.lt.s32.totalorder %s719_s15, 2  ;;  %s146_s26 = sand.u32 1, %s715_s14  }
   0xe   : > { %p802_p11 = por %p110_p7, %p59_p0  ;;  %p806_p12 = por %p116_p8, %p65_p3 }
   0xf   : > { %s534_s27 = sshll.u32 %s719_s15, 8  ;;  %s519_s28 = sshll.u32 %s146_s26, 4 }
  0x10   : > { %s935_s24 = scalar_select %p802_p11, 1, 0 }
  0x11   : > { %s936_s25 = scalar_select %p806_p12, 1, 0 }
  0x12   : > { %s815_s4 = scalar_lea.hbm %s929_s1, %s534_s27  ;;  %s150_s5 = scalar_lea.vmem [#allocation2], %s519_s28 }
  0x13   : > { %s157_s6 = sshll.u32 %s150_s5, 4  ;;  %p819_p13 = pnand %p577_p10, %p791_p5  ;;  %s823_s6 = int_to_ptr.vmem [resolvable:$true] %s157_s6 }
  0x14   : > { %s825_s8 = scalar_lea.sflag [#allocation3], %s146_s26  ;;  %s623_s9 = scalar_lea.hbm %s815_s4, 256 }
  0x15   : > { %p624_p0 = scmp.ne.s32.totalorder %s815_s4, %s623_s9  ;;  %p625_p1 = pneg %p819_p13 }
  0x16   : > { %s628_s17 = scalar_lea.hbm %s929_s1, 512  ;;  %p629_p4 = scmp.lt.u32.totalorder %s815_s4, %s929_s1 }
  0x17   : > { %p626_p2 = pnand %p625_p1, %p624_p0  ;;  %p630_p5 = scmp.lt.u32.totalorder %s628_s17, %s623_s9 }
  0x18   : > { %p632_p8 = scmp.lt.u32.totalorder %s623_s9, %s815_s4 }
  0x19   : > { %p627_p3 = pneg %p626_p2  ;;  %p631_p7 = por %p630_p5, %p629_p4 }
  0x1b   : > { %p633_p10 = por %p632_p8, %p631_p7 }
  0x1d   : > { %p634_p9 = pnand %p633_p10, %p627_p3 }
  0x1f   : > { %637 = shalt.err (!%p634_p9)
}
  0x20   : > { %s638_s22 = scalar_lea.vmem %s823_s6, 256  ;;  %s721_s26 = smov [#allocation2]  }
  0x21   : > { %p639_p0 = scmp.ne.s32.totalorder %s823_s6, %s638_s22  ;;  %s643_s27 = sshll.u32 %s721_s26, 4  ;;  %s644_s27 = int_to_ptr.vmem [resolvable:$false] %s643_s27 }
  0x22   : > { %s645_s28 = scalar_lea.vmem %s644_s27, 512  ;;  %p646_p11 = scmp.lt.s32.totalorder %s823_s6, %s644_s27 }
  0x23   : > { %p641_p2 = pnand %p639_p0, %p625_p1  ;;  %p647_p4 = scmp.lt.s32.totalorder %s645_s28, %s638_s22 }
  0x25   : > { %p642_p12 = pneg %p641_p2  ;;  %p648_p5 = por %p647_p4, %p646_p11 }
  0x27   : > { %p649_p7 = pnand %p648_p5, %p642_p12 }
  0x29   : > { %652 = shalt.err (!%p649_p7)
}
  0x2a   : > { %s722_s29 = smov 128   ;;  %s723_s30 = smov 8  }
  0x2b   : > { %572 = dma.hbm_to_vmem [thread:$0]  (!%p819_p13), %s815_s4, 256, %s823_s6, %s825_s8, %s722_s29, %s722_s29, %s723_s30  }
  0x2c   : > { %p522_p9 = scmp.ge.s32.totalorder %s719_s15, 1  ;;  %p165_p1 = scmp.lt.s32.totalorder %s719_s15, 3 }
  0x2e   : > { %p166_p3 = pnand %p522_p9, %p165_p1 }
  0x2f   : > { %s856_s5 = sand.u32 (!%p166_p3), 1, %s711_s13  }
  0x30   : > { %169 = sbr.rel (%p166_p3) target bundleno = 664 (0x298), region = 32  ;;  %s523_s9 = sshll.u32 (!%p166_p3), %s856_s5, 4 }
  0x31   : > { %s172_s10 = scalar_lea.sflag (!%p166_p3), [#allocation3], %s856_s5  ;;  %s860_s11 = scalar_lea.vmem (!%p166_p3), [#allocation2], %s523_s9 }
  0x37   : > { %698 = dma.done.wait (%p795_p6), %s172_s10, 256  }
  0x38   : > { %700 = vsyncadd (%p795_p6), %s172_s10, 4294967040  ;;  %p202_p11 = scmp.lt.s32.totalorder %s773_s16, 1  ;;  %v724_v0 = vmov 0   ;;  %v725_v1 = vmov 1   ;;  %s726_s19 = smov 127   ;;  %v228_v12 = vld [vmem:[%s860_s11] sm:$0xff]  ;;  %v234_v24 = vlaneseq }
  0x39   : > { %620 = vset.pattern.permute.xlu1 %v724_v0  ;;  %621 = vset.pattern.permute.xlu0 %v725_v1  ;;  %s727_s23 = smov 1   ;;  %v229_v13 = vld [vmem:[%s860_s11 + $0x8] sm:$0xff]  ;;  %v728_v15 = vmov 0.0|0.0   ;;  %v230_v19 = vld [vmem:[%s930_s2] sm:$0xff]  ;;  %vm729_vm7 = vmmov 0   ;;  %v730_v23 = vmov 0.0  }
  0x3a   : > { %s203_s4 = scalar_select %p202_p11, %s773_s16, 1  ;;  %v556_v14 = vpack.c.bf16 %v229_v13, %v228_v12  ;;  %560 = vmatprep.subr.bf16.mxu1 %v728_v15  ;;  %v231_v20 = vld [vmem:[%s930_s2 + $0x8] sm:$0xff]  ;;  %553 = vmatprep.mubr.msk.f32.mxu1 %vm729_vm7, %v730_v23  ;;  %v235_v26 = vand.u32 127, %v234_v24  ;;  %vm254_vm10 = vcmask 130048  }
  0x3b   : > { %v561_v21 = vpack.c.bf16 %v231_v20, %v230_v19  ;;  %s563_s28 = smul.u32 24, %s856_s5  ;;  %p938_p12 = scmp.ne.s32.totalorder %s935_s24, 0 }
  0x3c   : > { %s524_s6 = sshll.u32 %s203_s4, 3  ;;  %557 = vmatprep.subr.bf16.mxu0 %v556_v14  ;;  %s564_s9 = smul.u32 384, %s773_s16 }
  0x3d   : > { %s205_s17 = scalar_lea.vmem %s928_s0, %s524_s6  ;;  %559 = vmatpush3.bf16.msra.mxu0 %v556_v14  ;;  %562 = vmatpush3.bf16.msra.mxu1 %v561_v21  ;;  %s201_s29 = scalar_lea.vmem [#allocation5], %s563_s28 }
  0x3e   : > { %v206_v2 = vld [vmem:[%s205_s17] sm:$0xff]  ;;  %s434_s30 = sshll.u32 %s201_s29, 4  ;;  %s886_s4 = scalar_lea.hbm %s931_s3, %s564_s9  ;;  %s881_s30 = int_to_ptr.vmem [resolvable:$true] %s434_s30 }
  0x3f   : > { %vm207_vm0 = vcmp.gt.s32.totalorder %v206_v2, 0  ;;  %s420_s6 = scalar_lea.sflag [#allocation4], %s856_s5  ;;  %s653_s7 = scalar_lea.vmem %s881_s30, 384 }
  0x40   : > { %v208_v3 = vsel %vm207_vm0, 1, %v724_v0  ;;  %p654_p6 = scmp.ne.s32.totalorder %s881_s30, %s653_s7  ;;  %s731_s16 = smov [#allocation5]  }
  0x41   : > { %209 = vrot.lane.b32.xlu0 %v208_v3, %s726_s19  ;;  %v216_v4 = vmul.u32 %v208_v3, %v206_v2  ;;  %s657_s8 = sshll.u32 %s731_s16, 4  ;;  %s658_s8 = int_to_ptr.vmem [resolvable:$false] %s657_s8 }
  0x42   : > { %p655_p13 = pnand %p654_p6, %p938_p12  ;;  %s659_s17 = scalar_lea.vmem %s658_s8, 768 }
  0x43   : > { %vm217_vm1 = vcmp.gt.s32.totalorder %v216_v4, 0  ;;  %p660_p10 = scmp.lt.s32.totalorder %s881_s30, %s658_s8  ;;  %p661_p0 = scmp.lt.s32.totalorder %s659_s17, %s653_s7 }
  0x44   : > { %v218_v5 = vsel %vm217_vm1, %v216_v4, 0  ;;  %p656_p8 = pneg %p655_p13 }
  0x45   : > { %vm219_vm2 = vcmp.lt.s32.totalorder %v218_v5, 15  ;;  %p662_p2 = por %p661_p0, %p660_p10 }
  0x46   : > { %v220_v6 = vsel %vm219_vm2, %v218_v5, 15 }
  0x47   : > { %232 = vrot.lane.b32.xlu1 %v220_v6, %s726_s19  ;;  %p663_p4 = pnand %p662_p2, %p656_p8 }
  0xb3   : > { %v210_v7 = vpop.permute.xlu0 %209 }
  0xb4   : > { %v211_v8 = vmul.u32 %v210_v7, %v206_v2 }
  0xb6   : > { %vm212_vm3 = vcmp.gt.s32.totalorder %v211_v8, 0 }
  0xb7   : > { %v213_v9 = vsel %vm212_vm3, %v211_v8, 0 }
  0xb8   : > { %vm214_vm4 = vcmp.lt.s32.totalorder %v213_v9, 15 }
  0xb9   : > { %v215_v10 = vsel %vm214_vm4, %v213_v9, 15  ;;  %v233_v11 = vpop.permute.xlu1 %232 }
  0xba   : > { %221 = vrot.lane.b32.xlu0 %v215_v10, %s727_s23  ;;  %237 = vperm.xlu1 %620, %v215_v10  }
  0xbe   : > { %245 = vperm.xlu0 %621, %v208_v3   ;;  %240 = vperm.xlu1 %620, %v233_v11  }
  0xc2   : > { %622 = vset.pattern.permute.xlu1 %v725_v1 }
 0x12c   : > { %v222_v16 = vpop.permute.xlu0 %221 }
 0x12d   : > { %v223_v17 = vsub.s32 %v220_v6, %v222_v16 }
 0x12f   : > { %vm224_vm5 = vcmp.gt.s32.totalorder %v223_v17, 0 }
 0x130   : > { %v225_v18 = vsel %vm224_vm5, %v223_v17, 0 }
 0x131   : > { %vm226_vm6 = vcmp.lt.s32.totalorder %v225_v18, 15 }
 0x132   : > { %v227_v22 = vsel %vm226_vm6, %v225_v18, 15 }
 0x133   : > { %337 = vperm.xlu1 %622, %v227_v22  }
 0x139   : > { %v238_v25 = vpop.permute.xlu1 %237 }
 0x13a   : > { %vm242_vm8 = vcmp.eq.s32.totalorder %v235_v26, %v238_v25 }
 0x13d   : > { %v246_v27 = vpop.permute.xlu0 %245  ;;  %v241_v28 = vpop.permute.xlu1 %240 }
 0x13e   : > { %vm247_vm9 = vcmp.eq.s32.totalorder %v246_v27, 1  ;;  %vm243_vm11 = vcmp.eq.s32.totalorder %v235_v26, %v241_v28 }
 0x13f   : > { %vm248_vm12 = vmand %vm242_vm8, %vm247_vm9 }
 0x140   : > { %v525_v29 = vsel %vm248_vm12, 1.0, %v730_v23  ;;  %vm249_vm13 = vmand %vm243_vm11, %vm247_vm9 }
 0x141   : > { %546 = vmatprep.mubr.msk.f32.mxu0 %vm254_vm10, %v525_v29  ;;  %v526_v30 = vsel %vm249_vm13, 1.0, %v730_v23 }
 0x142   : > { %547 = vmatmul.mubr.msk.f32.vlgmr.msra.gmra.mrb[0].mxu0 %vm254_vm10, %v526_v30 }
 0x1b2   : > { %v338_v31 = vpop.permute.xlu1 %337 }
 0x1b3   : > { %vm339_vm14 = vcmp.eq.s32.totalorder %v235_v26, %v338_v31 }
 0x1b4   : > { %vm340_vm15 = vmand %vm339_vm14, %vm247_vm9 }
 0x1b5   : > { %v529_v32 = vsel %vm340_vm15, 1.0, %v730_v23 }
 0x1b6   : > { %554 = vmatmul.mubr.msk.f32.vlgmr.msra.gmra.mrb[0].mxu1 %vm254_vm10, %v529_v32 }
 0x215   : > { %v548_v33 = vpop.f32.mrb[0].mxu0 }
 0x216   : > { %417 = vst [vmem:[%s201_s29 + $0x8] sm:$0xff] %v548_v33  ;;  %v327_v34 = vpop.f32.mrb[1].mxu0 }
 0x217   : > { %416 = vst [vmem:[%s201_s29] sm:$0xff] %v327_v34 }
 0x289   : > { %v412_v35 = vpop.f32.mrb[0].mxu1 }
 0x28a   : > { %418 = vst [vmem:[%s201_s29 + $0x10] sm:$0xff] %v412_v35  ;;  %v555_v36 = vpop.f32.mrb[1].mxu1 }
 0x28b   : > { %666 = shalt.err (!%p663_p4)
}
 0x28c   : > { %s667_s5 = scalar_lea.hbm %s886_s4, 384  ;;  %s671_s20 = scalar_lea.hbm %s931_s3, 768 }
 0x28d   : > { %p668_p5 = scmp.ne.s32.totalorder %s886_s4, %s667_s5  ;;  %p672_p1 = scmp.lt.u32.totalorder %s886_s4, %s931_s3 }
 0x28e   : > { %p673_p3 = scmp.lt.u32.totalorder %s671_s20, %s667_s5  ;;  %p675_p6 = scmp.lt.u32.totalorder %s667_s5, %s886_s4 }
 0x28f   : > { %p669_p7 = pnand %p668_p5, %p938_p12 }
 0x290   : > { %p674_p11 = por %p673_p3, %p672_p1 }
 0x291   : > { %p670_p9 = pneg %p669_p7 }
 0x292   : > { %p676_p13 = por %p675_p6, %p674_p11 }
 0x294   : > { %p677_p8 = pnand %p676_p13, %p670_p9 }
 0x296   : > { %680 = shalt.err (!%p677_p8)
}
 0x297   : > { %567 = dma.vmem_to_hbm [thread:$0]  (%p938_p12), %s881_s30, 384, %s886_s4, %s420_s6  }
 0x298 PF: > { %s446_s27 = sand.u32 1, %s707_s12   ;;  %p939_p10 = scmp.ne.s32.totalorder %s936_s25, 0 }
 0x299   : > { %p940_p0 = scmp.ge.s32.totalorder %s719_s15, 2  ;;  %s447_s28 = scalar_lea.sflag [#allocation4], %s446_s27 }
 0x29b   : > { %p574_p2 = pnand %p940_p0, %p939_p10 }
 0x29d   : > { %702 = dma.done.wait (!%p574_p2), %s447_s28, 384  }
 0x29e   : > { %704 = vsyncadd (!%p574_p2), %s447_s28, 4294966912  ;;  %p16_p4 = scmp.ge.s32.totalorder %s777_s18, 4   ;;  %s941_s12 = smov %s711_s13 }
 0x29f   : > { %s942_s13 = smov %s715_s14  ;;  %s943_s14 = smov %s789_s21 }
 0x2a0   : > { %s944_s15 = smov %s777_s18  ;;  %18 = sbr.rel (!%p16_p4) target bundleno = 5 (0x5), region = 80 }
 0x2a7   :  { %452 = vsyncpa [#allocation3], 1 }
 0x2a8   :  { %454 = vsyncpa [#allocation3 + $0x1], 1 }
 0x2a9   :  { %455 = vsyncpa [#allocation4], 1 }
 0x2aa   :  { %457 = vsyncpa [#allocation4 + $0x1], 1 }

</bundles_post_ra>
